<compile_context>
chip_gen: v6e
topology: v6e:2x2x1
jax: 0.10.0
libtpu: 0.0.40
codegen_flags: <defaults>
</compile_context>

<pallas_src>
import jax
import jax.numpy as jnp
from jax.experimental import pallas as pl
from jax.experimental.pallas import tpu as pltpu

# ------------------------- model configuration -------------------------
D_IN = 32
CONFIG = dict(d_main=128, d_hidden=64, n_blocks=2,
              dropout_first=0.0, dropout_second=0.0)
D_MAIN = CONFIG["d_main"]
D_HIDDEN = CONFIG["d_hidden"]
N_BLOCKS = CONFIG["n_blocks"]
BN_EPS = 1e-5

BATCH = 16           # total rows (demo)
TILE_B_CAP = 2048    # rows per grid step; safe under the 16 MiB v5e scoped-VMEM
                     # default (~4.7 MiB double-buffered blocks + intermediates)


# ------------------------------ kernel ---------------------------------
def resnet_kernel(x_ref, wf_ref, bf_ref, w1_ref, b1_ref, w2_ref, b2_ref, o_ref):
    # first_layer: [TB, d_in](bf16) @ [d_in, d_main](bf16) -> f32 acc, + bias (f32, VPU)
    x = jnp.dot(x_ref[...], wf_ref[...],
                preferred_element_type=jnp.float32) + bf_ref[...]

    # residual blocks (n_blocks is small & static -> unrolled Python loop;
    # switch to lax.fori_loop(..., unroll=True) if n_blocks grows).
    for blk in range(N_BLOCKS):
        # BN is pre-folded into w1/b1 -> block is just Linear, ReLU, Linear, skip.
        h = jnp.dot(x.astype(jnp.bfloat16), w1_ref[blk],
                    preferred_element_type=jnp.float32) + b1_ref[blk]
        h = jnp.maximum(h, 0.0)                       # ReLU
        # (dropout_first: identity in eval)
        h = jnp.dot(h.astype(jnp.bfloat16), w2_ref[blk],
                    preferred_element_type=jnp.float32) + b2_ref[blk]
        # (dropout_second: identity in eval)
        x = x + h                                     # skip connection

    o_ref[...] = x.astype(o_ref.dtype)


# ------------------------------ tiling ----------------------------------
def _round_up(v, m):
    return -(-v // m) * m


def _choose_tiling(n, cap=TILE_B_CAP):
    """Pick (tile_b, n_pad): fat tiles, multiple of 16 (bf16 sublane packing),
    even number of grid steps for megacore when N exceeds the cap."""
    n16 = _round_up(n, 16)
    if n16 <= cap:
        tile_b = n16                                  # single fat step
    else:
        steps = _round_up(-(-n16 // cap), 2)          # even step count
        tile_b = _round_up(-(-n16 // steps), 16)
    n_pad = _round_up(n16, tile_b)
    return tile_b, n_pad


# ------------------------------ wrapper ---------------------------------
@jax.jit
def resnet_forward(x, params):
    n, d_in = x.shape
    assert d_in == D_IN
    tile_b, n_pad = _choose_tiling(n)

    # ---- host-side (loop-invariant) parameter preparation ----
    # Fold BatchNorm (eval) into the first linear of each block.
    scale = params["gamma"] * jax.lax.rsqrt(params["var"] + BN_EPS)   # (B,1,D)
    shift = params["beta"] - params["mean"] * scale                   # (B,1,D)
    w1_f = jnp.swapaxes(scale, 1, 2) * params["w1"]                   # (B,D,H)
    b1_f = jnp.matmul(shift, params["w1"]) + params["b1"]             # (B,1,H)

    # bf16 weights + bf16 activations for the MXU; biases stay f32 (VPU add).
    wf = params["wf"].astype(jnp.bfloat16)
    w1 = w1_f.astype(jnp.bfloat16)
    w2 = params["w2"].astype(jnp.bfloat16)
    bf = params["bf"].astype(jnp.float32)
    b1 = b1_f.astype(jnp.float32)
    b2 = params["b2"].astype(jnp.float32)

    x_bf = x.astype(jnp.bfloat16)
    if n_pad != n:
        x_bf = jnp.pad(x_bf, ((0, n_pad - n), (0, 0)))

    full = lambda shape: pl.BlockSpec(shape, lambda i: (0,) * len(shape))

    grid_spec = pltpu.PrefetchScalarGridSpec(
        num_scalar_prefetch=0,
        grid=(n_pad // tile_b,),
        in_specs=[
            pl.BlockSpec((tile_b, D_IN), lambda i: (i, 0)),           # x (bf16)
            full((D_IN, D_MAIN)),                                     # W_first (bf16)
            full((1, D_MAIN)),                                        # b_first
            full((N_BLOCKS, D_MAIN, D_HIDDEN)),                       # W1 (BN-folded, bf16)
            full((N_BLOCKS, 1, D_HIDDEN)),                            # b1 (BN-folded)
            full((N_BLOCKS, D_HIDDEN, D_MAIN)),                       # W2 (bf16)
            full((N_BLOCKS, 1, D_MAIN)),                              # b2
        ],
        out_specs=pl.BlockSpec((tile_b, D_MAIN), lambda i: (i, 0)),
    )

    flops = 2 * n_pad * (D_IN * D_MAIN + N_BLOCKS * 2 * D_MAIN * D_HIDDEN)
    bytes_accessed = (
        n_pad * D_IN * 2 + n_pad * D_MAIN * 4                          # x in, out
        + D_IN * D_MAIN * 2 + D_MAIN * 4                               # first layer
        + N_BLOCKS * (2 * D_MAIN * D_HIDDEN * 2 + D_HIDDEN * 4 + D_MAIN * 4)
    )

    out = pl.pallas_call(
        resnet_kernel,
        out_shape=jax.ShapeDtypeStruct((n_pad, D_MAIN), jnp.float32),
        grid_spec=grid_spec,
        compiler_params=pltpu.CompilerParams(
            dimension_semantics=("parallel",)),     # megacore-shards the batch axis
        cost_estimate=pl.CostEstimate(
            flops=flops, bytes_accessed=bytes_accessed, transcendentals=0),
    )(x_bf, wf, bf, w1, b1, w2, b2)

    return out[:n] if n_pad != n else out


# --------------------- deterministic parameter init ---------------------
def init_params(key):
    ks = jax.random.split(key, 12)
    u = lambda k, shape, s: jax.random.uniform(k, shape, jnp.float32, -s, s)
    params = {
        "wf": u(ks[0], (D_IN, D_MAIN), 1.0 / jnp.sqrt(D_IN)),
        "bf": u(ks[1], (1, D_MAIN), 1.0 / jnp.sqrt(D_IN)),
        "gamma": 1.0 + 0.1 * jax.random.normal(ks[2], (N_BLOCKS, 1, D_MAIN)),
        "beta": 0.1 * jax.random.normal(ks[3], (N_BLOCKS, 1, D_MAIN)),
        "mean": 0.1 * jax.random.normal(ks[4], (N_BLOCKS, 1, D_MAIN)),
        "var": 0.9 + 0.2 * jax.random.uniform(ks[5], (N_BLOCKS, 1, D_MAIN)),
        "w1": u(ks[6], (N_BLOCKS, D_MAIN, D_HIDDEN), 1.0 / jnp.sqrt(D_MAIN)),
        "b1": u(ks[7], (N_BLOCKS, 1, D_HIDDEN), 1.0 / jnp.sqrt(D_MAIN)),
        "w2": u(ks[8], (N_BLOCKS, D_HIDDEN, D_MAIN), 1.0 / jnp.sqrt(D_HIDDEN)),
        "b2": u(ks[9], (N_BLOCKS, 1, D_MAIN), 1.0 / jnp.sqrt(D_HIDDEN)),
    }
    return {k: v.astype(jnp.float32) for k, v in params.items()}


# ---------------------------- JAX reference ------------------------------
def resnet_ref(x, p):
    # Unfolded, full-precision reference (checks BN folding + bf16 path).
    x = x @ p["wf"] + p["bf"]
    for b in range(N_BLOCKS):
        h = (x - p["mean"][b]) * (p["gamma"][b]
                                  * jax.lax.rsqrt(p["var"][b] + BN_EPS)) + p["beta"][b]
        h = jnp.maximum(h @ p["w1"][b] + p["b1"][b], 0.0)
        h = h @ p["w2"][b] + p["b2"][b]
        x = x + h
    return x


if __name__ == "__main__":
    key = jax.random.PRNGKey(0)
    kx, kp = jax.random.split(key)
    x = jax.random.normal(kx, (BATCH, D_IN), dtype=jnp.float32)
    params = init_params(kp)

    out = resnet_forward(x, params)
    out = jax.block_until_ready(out)

    ref = resnet_ref(x, params)
    assert out.shape == (BATCH, D_MAIN)
    # bf16 weights/activations -> looser tolerance than pure f32.
    assert jnp.allclose(out, ref, atol=3e-2, rtol=3e-2), \
        float(jnp.max(jnp.abs(out - ref)))

    print("KERNEL_OK")
</pallas_src>

<mosaic_0001>
module attributes {stable_mosaic.version = 11 : i64} {
  func.func @resnet_kernel(%arg0: i32, %arg1: memref<16x32xbf16, #tpu.memory_space<vmem>>, %arg2: memref<32x128xbf16, #tpu.memory_space<vmem>>, %arg3: memref<1x128xf32, #tpu.memory_space<vmem>>, %arg4: memref<2x128x64xbf16, #tpu.memory_space<vmem>>, %arg5: memref<2x1x64xf32, #tpu.memory_space<vmem>>, %arg6: memref<2x64x128xbf16, #tpu.memory_space<vmem>>, %arg7: memref<2x1x128xf32, #tpu.memory_space<vmem>>, %arg8: memref<16x128xf32, #tpu.memory_space<vmem>>) attributes {dimension_semantics = [#tpu.dimension_semantics<parallel>], iteration_bounds = array<i64: 1>, scalar_prefetch = 0 : i64, scratch_operands = 0 : i64, tpu.core_type = #tpu.core_type<tc>, window_params = [{transform_indices = @transform_0, window_bounds = array<i64: 16, 32>}, {pipeline_mode = #tpu.pipeline_mode<synchronous>, transform_indices = @transform_1, window_bounds = array<i64: 32, 128>}, {pipeline_mode = #tpu.pipeline_mode<synchronous>, transform_indices = @transform_2, window_bounds = array<i64: 1, 128>}, {pipeline_mode = #tpu.pipeline_mode<synchronous>, transform_indices = @transform_3, window_bounds = array<i64: 2, 128, 64>}, {pipeline_mode = #tpu.pipeline_mode<synchronous>, transform_indices = @transform_4, window_bounds = array<i64: 2, 1, 64>}, {pipeline_mode = #tpu.pipeline_mode<synchronous>, transform_indices = @transform_5, window_bounds = array<i64: 2, 64, 128>}, {pipeline_mode = #tpu.pipeline_mode<synchronous>, transform_indices = @transform_6, window_bounds = array<i64: 2, 1, 128>}, {transform_indices = @transform_7, window_bounds = array<i64: 16, 128>}]} {
    %c0 = arith.constant 0 : index
    %c0_0 = arith.constant 0 : index
    %0 = vector.load %arg1[%c0, %c0_0] : memref<16x32xbf16, #tpu.memory_space<vmem>>, vector<16x32xbf16>
    %c0_1 = arith.constant 0 : index
    %c0_2 = arith.constant 0 : index
    %1 = vector.load %arg2[%c0_1, %c0_2] : memref<32x128xbf16, #tpu.memory_space<vmem>>, vector<32x128xbf16>
    %cst = arith.constant dense<0.000000e+00> : vector<16x128xf32>
    %2 = tpu.matmul %0, %1, %cst {dimension_numbers = #tpu.dot_dimension_numbers<[1], [0], [0], [1], [0, 0, 1, 1], [], []>} : vector<16x32xbf16>, vector<32x128xbf16>, vector<16x128xf32> -> vector<16x128xf32>
    %c0_3 = arith.constant 0 : index
    %c0_4 = arith.constant 0 : index
    %3 = vector.load %arg3[%c0_3, %c0_4] : memref<1x128xf32, #tpu.memory_space<vmem>>, vector<1x128xf32>
    %4 = vector.broadcast %3 : vector<1x128xf32> to vector<16x128xf32>
    %5 = arith.addf %2, %4 : vector<16x128xf32>
    %6 = arith.truncf %5 : vector<16x128xf32> to vector<16x128xbf16>
    %c0_5 = arith.constant 0 : index
    %c0_6 = arith.constant 0 : index
    %c0_7 = arith.constant 0 : index
    %7 = vector.load %arg4[%c0_5, %c0_6, %c0_7] : memref<2x128x64xbf16, #tpu.memory_space<vmem>>, vector<1x128x64xbf16>
    %8 = vector.shape_cast %7 : vector<1x128x64xbf16> to vector<128x64xbf16>
    %cst_8 = arith.constant dense<0.000000e+00> : vector<16x64xf32>
    %9 = tpu.matmul %6, %8, %cst_8 {dimension_numbers = #tpu.dot_dimension_numbers<[1], [0], [0], [1], [0, 0, 1, 1], [], []>} : vector<16x128xbf16>, vector<128x64xbf16>, vector<16x64xf32> -> vector<16x64xf32>
    %c0_9 = arith.constant 0 : index
    %c0_10 = arith.constant 0 : index
    %c0_11 = arith.constant 0 : index
    %10 = vector.load %arg5[%c0_9, %c0_10, %c0_11] : memref<2x1x64xf32, #tpu.memory_space<vmem>>, vector<1x1x64xf32>
    %11 = vector.shape_cast %10 : vector<1x1x64xf32> to vector<1x64xf32>
    %12 = vector.broadcast %11 : vector<1x64xf32> to vector<16x64xf32>
    %13 = arith.addf %9, %12 : vector<16x64xf32>
    %cst_12 = arith.constant 0.000000e+00 : f32
    %14 = vector.broadcast %cst_12 : f32 to vector<16x64xf32>
    %15 = arith.maximumf %13, %14 : vector<16x64xf32>
    %16 = arith.truncf %15 : vector<16x64xf32> to vector<16x64xbf16>
    %c0_13 = arith.constant 0 : index
    %c0_14 = arith.constant 0 : index
    %c0_15 = arith.constant 0 : index
    %17 = vector.load %arg6[%c0_13, %c0_14, %c0_15] : memref<2x64x128xbf16, #tpu.memory_space<vmem>>, vector<1x64x128xbf16>
    %18 = vector.shape_cast %17 : vector<1x64x128xbf16> to vector<64x128xbf16>
    %cst_16 = arith.constant dense<0.000000e+00> : vector<16x128xf32>
    %19 = tpu.matmul %16, %18, %cst_16 {dimension_numbers = #tpu.dot_dimension_numbers<[1], [0], [0], [1], [0, 0, 1, 1], [], []>} : vector<16x64xbf16>, vector<64x128xbf16>, vector<16x128xf32> -> vector<16x128xf32>
    %c0_17 = arith.constant 0 : index
    %c0_18 = arith.constant 0 : index
    %c0_19 = arith.constant 0 : index
    %20 = vector.load %arg7[%c0_17, %c0_18, %c0_19] : memref<2x1x128xf32, #tpu.memory_space<vmem>>, vector<1x1x128xf32>
    %21 = vector.shape_cast %20 : vector<1x1x128xf32> to vector<1x128xf32>
    %22 = vector.broadcast %21 : vector<1x128xf32> to vector<16x128xf32>
    %23 = arith.addf %19, %22 : vector<16x128xf32>
    %24 = arith.addf %5, %23 : vector<16x128xf32>
    %25 = arith.truncf %24 : vector<16x128xf32> to vector<16x128xbf16>
    %c1 = arith.constant 1 : index
    %c0_20 = arith.constant 0 : index
    %c0_21 = arith.constant 0 : index
    %26 = vector.load %arg4[%c1, %c0_20, %c0_21] : memref<2x128x64xbf16, #tpu.memory_space<vmem>>, vector<1x128x64xbf16>
    %27 = vector.shape_cast %26 : vector<1x128x64xbf16> to vector<128x64xbf16>
    %cst_22 = arith.constant dense<0.000000e+00> : vector<16x64xf32>
    %28 = tpu.matmul %25, %27, %cst_22 {dimension_numbers = #tpu.dot_dimension_numbers<[1], [0], [0], [1], [0, 0, 1, 1], [], []>} : vector<16x128xbf16>, vector<128x64xbf16>, vector<16x64xf32> -> vector<16x64xf32>
    %c1_23 = arith.constant 1 : index
    %c0_24 = arith.constant 0 : index
    %c0_25 = arith.constant 0 : index
    %29 = vector.load %arg5[%c1_23, %c0_24, %c0_25] : memref<2x1x64xf32, #tpu.memory_space<vmem>>, vector<1x1x64xf32>
    %30 = vector.shape_cast %29 : vector<1x1x64xf32> to vector<1x64xf32>
    %31 = vector.broadcast %30 : vector<1x64xf32> to vector<16x64xf32>
    %32 = arith.addf %28, %31 : vector<16x64xf32>
    %cst_26 = arith.constant 0.000000e+00 : f32
    %33 = vector.broadcast %cst_26 : f32 to vector<16x64xf32>
    %34 = arith.maximumf %32, %33 : vector<16x64xf32>
    %35 = arith.truncf %34 : vector<16x64xf32> to vector<16x64xbf16>
    %c1_27 = arith.constant 1 : index
    %c0_28 = arith.constant 0 : index
    %c0_29 = arith.constant 0 : index
    %36 = vector.load %arg6[%c1_27, %c0_28, %c0_29] : memref<2x64x128xbf16, #tpu.memory_space<vmem>>, vector<1x64x128xbf16>
    %37 = vector.shape_cast %36 : vector<1x64x128xbf16> to vector<64x128xbf16>
    %cst_30 = arith.constant dense<0.000000e+00> : vector<16x128xf32>
    %38 = tpu.matmul %35, %37, %cst_30 {dimension_numbers = #tpu.dot_dimension_numbers<[1], [0], [0], [1], [0, 0, 1, 1], [], []>} : vector<16x64xbf16>, vector<64x128xbf16>, vector<16x128xf32> -> vector<16x128xf32>
    %c1_31 = arith.constant 1 : index
    %c0_32 = arith.constant 0 : index
    %c0_33 = arith.constant 0 : index
    %39 = vector.load %arg7[%c1_31, %c0_32, %c0_33] : memref<2x1x128xf32, #tpu.memory_space<vmem>>, vector<1x1x128xf32>
    %40 = vector.shape_cast %39 : vector<1x1x128xf32> to vector<1x128xf32>
    %41 = vector.broadcast %40 : vector<1x128xf32> to vector<16x128xf32>
    %42 = arith.addf %38, %41 : vector<16x128xf32>
    %43 = arith.addf %24, %42 : vector<16x128xf32>
    %c0_34 = arith.constant 0 : index
    %c0_35 = arith.constant 0 : index
    %44 = vector.load %arg8[%c0_34, %c0_35] : memref<16x128xf32, #tpu.memory_space<vmem>>, vector<16x128xf32>
    tpu.vector_store %arg8[%c0_34, %c0_35], %43 {strides = array<i32>} : memref<16x128xf32, #tpu.memory_space<vmem>>, vector<16x128xf32>,
    return
  }
  func.func @transform_0(%arg0: i32) -> (i32, i32) {
    %c0_i32 = arith.constant 0 : i32
    %c0_i32_0 = arith.constant 0 : i32
    return %arg0, %c0_i32 : i32, i32
  }
  func.func @transform_1(%arg0: i32) -> (i32, i32) {
    %c0_i32 = arith.constant 0 : i32
    %c0_i32_0 = arith.constant 0 : i32
    %c0_i32_1 = arith.constant 0 : i32
    return %c0_i32, %c0_i32_0 : i32, i32
  }
  func.func @transform_2(%arg0: i32) -> (i32, i32) {
    %c0_i32 = arith.constant 0 : i32
    %c0_i32_0 = arith.constant 0 : i32
    %c0_i32_1 = arith.constant 0 : i32
    return %c0_i32, %c0_i32_0 : i32, i32
  }
  func.func @transform_3(%arg0: i32) -> (i32, i32, i32) {
    %c0_i32 = arith.constant 0 : i32
    %c0_i32_0 = arith.constant 0 : i32
    %c0_i32_1 = arith.constant 0 : i32
    %c0_i32_2 = arith.constant 0 : i32
    return %c0_i32, %c0_i32_0, %c0_i32_1 : i32, i32, i32
  }
  func.func @transform_4(%arg0: i32) -> (i32, i32, i32) {
    %c0_i32 = arith.constant 0 : i32
    %c0_i32_0 = arith.constant 0 : i32
    %c0_i32_1 = arith.constant 0 : i32
    %c0_i32_2 = arith.constant 0 : i32
    return %c0_i32, %c0_i32_0, %c0_i32_1 : i32, i32, i32
  }
  func.func @transform_5(%arg0: i32) -> (i32, i32, i32) {
    %c0_i32 = arith.constant 0 : i32
    %c0_i32_0 = arith.constant 0 : i32
    %c0_i32_1 = arith.constant 0 : i32
    %c0_i32_2 = arith.constant 0 : i32
    return %c0_i32, %c0_i32_0, %c0_i32_1 : i32, i32, i32
  }
  func.func @transform_6(%arg0: i32) -> (i32, i32, i32) {
    %c0_i32 = arith.constant 0 : i32
    %c0_i32_0 = arith.constant 0 : i32
    %c0_i32_1 = arith.constant 0 : i32
    %c0_i32_2 = arith.constant 0 : i32
    return %c0_i32, %c0_i32_0, %c0_i32_1 : i32, i32, i32
  }
  func.func @transform_7(%arg0: i32) -> (i32, i32) {
    %c0_i32 = arith.constant 0 : i32
    %c0_i32_0 = arith.constant 0 : i32
    return %arg0, %c0_i32 : i32, i32
  }
}

</mosaic_0001>

<bundles_post_ra>
// kernel: resnet_forward.1
= control target key start
LH: loop header
LB: loop body
LE: loop exit
PB: predicated region body
PF: predicated region fallthrough
CT: control target
= control target key end

     0   :  { %v746_v1 = vmov 0.0   ;;  %vm747_vm0 = vmmov 0   ;;  %vm58_vm1 = vcmask 261120   ;;  %s928_s0 = inlined_call_operand.vmem [shape: bf16[16,32], index: 0, kind: input, shape index: {}]   ;;  %s929_s1 = inlined_call_operand.vmem [shape: bf16[32,128], index: 1, kind: input, shape index: {}]   ;;  %s930_s2 = inlined_call_operand.vmem [shape: f32[1,128], index: 2, kind: input, shape index: {}]   ;;  %s931_s3 = inlined_call_operand.vmem [shape: bf16[2,128,64], index: 3, kind: input, shape index: {}]   ;;  %s932_s4 = inlined_call_operand.vmem [shape: f32[2,1,64], index: 4, kind: input, shape index: {}]   ;;  %s933_s5 = inlined_call_operand.vmem [shape: bf16[2,64,128], index: 5, kind: input, shape index: {}]   ;;  %s934_s6 = inlined_call_operand.vmem [shape: f32[2,1,128], index: 6, kind: input, shape index: {}]   ;;  %s935_s7 = inlined_call_operand.hbm [shape: f32[16,128], index: 7, kind: output, shape index: {}]  }
   0x1   :  { %v697_v0 = vld [vmem:[%s929_s1 + $0x8] sm:$0xff]   ;;  %620 = vmatprep.subr.bf16.mxu0 %v746_v1  ;;  %628 = vmatprep.subr.bf16.mxu1 %v746_v1  ;;  %v698_v2 = vld [vmem:[%s929_s1] sm:$0xff]   ;;  %v700_v3 = vld [vmem:[%s931_s3 + $0x38] sm:$0xff]  }
   0x2   :  { %621 = vmatpush3.bf16.msra.mxu0 %v697_v0  ;;  %624 = vmatprep.mubr.msk.bf16.mxu0 %vm747_vm0, %v746_v1  ;;  %v699_v4 = vld [vmem:[%s928_s0] sm:$0xff]   ;;  %v701_v5 = vld [vmem:[%s931_s3 + $0x30] sm:$0xff]   ;;  %v702_v6 = vld [vmem:[%s931_s3 + $0x28] sm:$0xff]  }
   0x3   :  { %622 = vmatprep.subr.bf16.mxu0 %v746_v1  ;;  %644 = vmatprep.mubr.msk.bf16.mxu1 %vm747_vm0, %v746_v1  ;;  %v703_v7 = vld [vmem:[%s931_s3 + $0x20] sm:$0xff]   ;;  %v704_v8 = vld [vmem:[%s931_s3 + $0x18] sm:$0xff]   ;;  %v705_v9 = vld [vmem:[%s931_s3 + $0x10] sm:$0xff]  }
   0x4   :  { %629 = vmatpush3.bf16.msra.mxu1 %v700_v3 }
   0x5   :  { %630 = vmatprep.subr.bf16.mxu1 %v746_v1 }
   0x6   :  { %623 = vmatpush3.bf16.msra.mxu0 %v698_v2 }
   0x7   :  { %648 = vmatprep.subr.bf16.mxu0 %v746_v1 }
   0x8   :  { %631 = vmatpush3.bf16.msra.mxu1 %v701_v5 }
   0x9   :  { %625 = vmatmul.mubr.msk.bf16.vlgmr.msra.gmra.mxu0 %vm58_vm1, %v699_v4  ;;  %632 = vmatprep.subr.bf16.mxu1 %v746_v1 }
   0xa   :  { %656 = vmatprep.mubr.msk.bf16.mxu0 %vm747_vm0, %v746_v1 }
   0xc   :  { %633 = vmatpush3.bf16.msra.mxu1 %v702_v6 }
   0xd   :  { %634 = vmatprep.subr.bf16.mxu1 %v746_v1 }
  0x10   :  { %635 = vmatpush3.bf16.msra.mxu1 %v703_v7 }
  0x11   :  { %636 = vmatprep.subr.bf16.mxu1 %v746_v1 }
  0x14   :  { %637 = vmatpush3.bf16.msra.mxu1 %v704_v8 }
  0x15   :  { %12 = vsyncpa [#allocation3], 0  ;;  %638 = vmatprep.subr.bf16.mxu1 %v746_v1  ;;  %v706_v10 = vld [vmem:[%s931_s3 + $0x8] sm:$0xff]   ;;  %v707_v11 = vld [vmem:[%s931_s3] sm:$0xff]   ;;  %vm258_vm2 = vcmask 523264  }
  0x16   :  { %v708_v12 = vld [vmem:[%s933_s5 + $0x18] sm:$0xff]   ;;  %v528_v14 = vld [vmem:[%s930_s2] ss:$0 sm:$0xff]  ;;  %v709_v21 = vld [vmem:[%s933_s5 + $0x10] sm:$0xff]  }
  0x17   :  { %649 = vmatpush3.bf16.msra.mxu0 %v708_v12  ;;  %v710_v22 = vld [vmem:[%s933_s5 + $0x8] sm:$0xff]   ;;  %v711_v23 = vld [vmem:[%s933_s5] sm:$0xff]   ;;  %v712_v33 = vld [vmem:[%s931_s3 + $0x78] sm:$0xff]  }
  0x18   :  { %639 = vmatpush3.bf16.msra.mxu1 %v705_v9  ;;  %650 = vmatprep.subr.bf16.mxu0 %v746_v1  ;;  %v533_v24 = vld [vmem:[%s932_s4] ss:$0 sm:$0xff]  ;;  %v713_v35 = vld [vmem:[%s931_s3 + $0x70] sm:$0xff]   ;;  %v714_v36 = vld [vmem:[%s931_s3 + $0x68] sm:$0xff]  }
  0x19   :  { %640 = vmatprep.subr.bf16.mxu1 %v746_v1  ;;  %v715_v37 = vld [vmem:[%s931_s3 + $0x60] sm:$0xff]   ;;  %v716_v38 = vld [vmem:[%s931_s3 + $0x58] sm:$0xff]   ;;  %v717_v39 = vld [vmem:[%s931_s3 + $0x50] sm:$0xff]  }
  0x1a   :  { %v718_v40 = vld [vmem:[%s931_s3 + $0x48] sm:$0xff]   ;;  %v719_v41 = vld [vmem:[%s931_s3 + $0x40] sm:$0xff]   ;;  %v720_v42 = vld [vmem:[%s933_s5 + $0x38] sm:$0xff]  }
  0x1b   :  { %651 = vmatpush3.bf16.msra.mxu0 %v709_v21  ;;  %v542_v43 = vld [vmem:[%s934_s6] ss:$0 sm:$0xff]  ;;  %v721_v53 = vld [vmem:[%s933_s5 + $0x30] sm:$0xff]   ;;  %v722_v54 = vld [vmem:[%s933_s5 + $0x28] sm:$0xff]  }
  0x1c   :  { %641 = vmatpush3.bf16.msra.mxu1 %v706_v10  ;;  %652 = vmatprep.subr.bf16.mxu0 %v746_v1  ;;  %v723_v55 = vld [vmem:[%s933_s5 + $0x20] sm:$0xff]  }
  0x1d   :  { %642 = vmatprep.subr.bf16.mxu1 %v746_v1  ;;  %v565_v56 = vld [vmem:[%s932_s4 + $0x1] ss:$0 sm:$0xff]  ;;  %s748_s4 = smov [#allocation2]  }
  0x1e   :  { %s517_s5 = sshll.u32 %s748_s4, 4  ;;  %s518_s5 = int_to_ptr.vmem [resolvable:$true] %s517_s5 }
  0x1f   :  { %653 = vmatpush3.bf16.msra.mxu0 %v710_v22  ;;  %s724_s11 = scalar_lea.vmem %s518_s5, 256  ;;  %p729_p1 = scmp.lt.s32.totalorder %s518_s5, %s518_s5 }
  0x20   :  { %643 = vmatpush3.bf16.msra.mxu1 %v707_v11  ;;  %654 = vmatprep.subr.bf16.mxu0 %v746_v1  ;;  %p725_p0 = scmp.ne.s32.totalorder %s518_s5, %s724_s11  ;;  %p730_p2 = scmp.lt.s32.totalorder %s724_s11, %s724_s11 }
  0x21   :  { %680 = vmatprep.subr.bf16.mxu1 %v746_v1 }
  0x22   :  { %p731_p3 = por %p730_p2, %p729_p1 }
  0x23   :  { %655 = vmatpush3.bf16.msra.mxu0 %v711_v23 }
  0x24   :  { %660 = vmatprep.subr.bf16.mxu0 %v746_v1  ;;  %p732_p4 = pnand %p731_p3, %p725_p0 }
  0xc9   :  { %v96_v13 = vpop.f32.mrf.mxu0 }
  0xca   :  { %v97_v17 = vadd.f32 %v528_v14, %v96_v13 }
  0xcb   :  { %v626_v15 = vpop.f32.mrf.mxu0 }
  0xcd   :  { %v99_v16 = vpop.f32.mrf.mxu0 }
  0xce   :  { %v100_v18 = vadd.f32 %v528_v14, %v99_v16 }
  0xcf   :  { %v627_v19 = vpop.f32.mrf.mxu0 }
  0xd0   :  { %v103_v20 = vpack.c.bf16 %v100_v18, %v97_v17 }
  0xd2   :  { %645 = vmatmul.mubr.bf16.vlgmr.msra.gmra.mxu1 %v103_v20 }
  0xd3   :  { %688 = vmatprep.mubr.msk.bf16.mxu1 %vm747_vm0, %v746_v1  ;;  %681 = vmatpush3.bf16.msra.mxu1 %v720_v42 }
  0xd4   :  { %682 = vmatprep.subr.bf16.mxu1 %v746_v1 }
  0xd7   :  { %683 = vmatpush3.bf16.msra.mxu1 %v721_v53 }
  0xd8   :  { %684 = vmatprep.subr.bf16.mxu1 %v746_v1 }
  0xdb   :  { %685 = vmatpush3.bf16.msra.mxu1 %v722_v54 }
  0xdc   :  { %686 = vmatprep.subr.bf16.mxu1 %v746_v1 }
  0xdf   :  { %687 = vmatpush3.bf16.msra.mxu1 %v723_v55 }
 0x192   :  { %v209_v25 = vpop.f32.mrf.mxu1 }
 0x193   :  { %v210_v27 = vadd.f32 %v533_v24, %v209_v25 }
 0x194   :  { %v646_v26 = vpop.f32.mrf.mxu1 }
 0x195   :  { %v216_v31 = vmax.f32 %v210_v27, 0.0 }
 0x196   :  { %v212_v28 = vpop.f32.mrf.mxu1 }
 0x197   :  { %v213_v29 = vadd.f32 %v533_v24, %v212_v28 }
 0x198   :  { %v647_v30 = vpop.f32.mrf.mxu1 }
 0x199   :  { %v217_v32 = vmax.f32 %v213_v29, 0.0 }
 0x19b   :  { %v218_v34 = vpack.c.bf16 %v217_v32, %v216_v31 }
 0x19d   :  { %657 = vmatmul.mubr.msk.bf16.vlgmr.msra.gmra.mxu0 %vm258_vm2, %v218_v34 }
 0x19e   :  { %661 = vmatpush3.bf16.msra.mxu0 %v712_v33  ;;  %676 = vmatprep.mubr.msk.bf16.mxu0 %vm747_vm0, %v746_v1 }
 0x19f   :  { %662 = vmatprep.subr.bf16.mxu0 %v746_v1 }
 0x1a2   :  { %663 = vmatpush3.bf16.msra.mxu0 %v713_v35 }
 0x1a3   :  { %664 = vmatprep.subr.bf16.mxu0 %v746_v1 }
 0x1a6   :  { %665 = vmatpush3.bf16.msra.mxu0 %v714_v36 }
 0x1a7   :  { %666 = vmatprep.subr.bf16.mxu0 %v746_v1 }
 0x1aa   :  { %667 = vmatpush3.bf16.msra.mxu0 %v715_v37 }
 0x1ab   :  { %668 = vmatprep.subr.bf16.mxu0 %v746_v1 }
 0x1ae   :  { %669 = vmatpush3.bf16.msra.mxu0 %v716_v38 }
 0x1af   :  { %670 = vmatprep.subr.bf16.mxu0 %v746_v1 }
 0x1b2   :  { %671 = vmatpush3.bf16.msra.mxu0 %v717_v39 }
 0x1b3   :  { %672 = vmatprep.subr.bf16.mxu0 %v746_v1 }
 0x1b6   :  { %673 = vmatpush3.bf16.msra.mxu0 %v718_v40 }
 0x1b7   :  { %674 = vmatprep.subr.bf16.mxu0 %v746_v1  ;;  %v583_v1 = vld [vmem:[%s934_s6 + $0x1] ss:$0 sm:$0xff] }
 0x1ba   :  { %675 = vmatpush3.bf16.msra.mxu0 %v719_v41 }
 0x25d   :  { %v296_v44 = vpop.f32.mrf.mxu0 }
 0x25e   :  { %v297_v46 = vadd.f32 %v542_v43, %v296_v44 }
 0x25f   :  { %v658_v45 = vpop.f32.mrf.mxu0 }
 0x260   :  { %v303_v50 = vadd.f32 %v297_v46, %v97_v17 }
 0x261   :  { %v299_v47 = vpop.f32.mrf.mxu0 }
 0x262   :  { %v300_v48 = vadd.f32 %v542_v43, %v299_v47 }
 0x263   :  { %v659_v49 = vpop.f32.mrf.mxu0 }
 0x264   :  { %v304_v51 = vadd.f32 %v300_v48, %v100_v18 }
 0x266   :  { %v305_v52 = vpack.c.bf16 %v304_v51, %v303_v50 }
 0x268   :  { %677 = vmatmul.mubr.bf16.vlgmr.msra.gmra.mxu0 %v305_v52 }
 0x328   :  { %v413_v57 = vpop.f32.mrf.mxu0 }
 0x329   :  { %v414_v59 = vadd.f32 %v565_v56, %v413_v57 }
 0x32a   :  { %v678_v58 = vpop.f32.mrf.mxu0 }
 0x32b   :  { %v420_v63 = vmax.f32 %v414_v59, 0.0 }
 0x32c   :  { %v416_v60 = vpop.f32.mrf.mxu0 }
 0x32d   :  { %v417_v61 = vadd.f32 %v565_v56, %v416_v60 }
 0x32e   :  { %v679_v62 = vpop.f32.mrf.mxu0 }
 0x32f   :  { %v421_v0 = vmax.f32 %v417_v61, 0.0 }
 0x331   :  { %v422_v2 = vpack.c.bf16 %v421_v0, %v420_v63 }
 0x333   :  { %689 = vmatmul.mubr.msk.bf16.vlgmr.msra.gmra.mxu1 %vm258_vm2, %v422_v2 }
 0x3f3   :  { %v501_v3 = vpop.f32.mrf.mxu1 }
 0x3f4   :  { %v502_v4 = vadd.f32 %v583_v1, %v501_v3 }
 0x3f5   :  { %v690_v5 = vpop.f32.mrf.mxu1 }
 0x3f6   :  { %v508_v6 = vadd.f32 %v502_v4, %v303_v50 }
 0x3f7   :  { %v504_v7 = vpop.f32.mrf.mxu1 }
 0x3f8   :  { %510 = vst [vmem:[#allocation2] sm:$0xff] %v508_v6  ;;  %v505_v8 = vadd.f32 %v583_v1, %v504_v7 }
 0x3f9   :  { %v691_v9 = vpop.f32.mrf.mxu1 }
 0x3fa   :  { %v509_v10 = vadd.f32 %v505_v8, %v304_v51 }
 0x3fc   :  { %511 = vst [vmem:[#allocation2 + $0x8] sm:$0xff] %v509_v10 }
 0x3fd   :  { %735 = shalt.err (!%p732_p4)
}
 0x3fe   :  { %s749_s6 = smov 128   ;;  %s750_s0 = smov 8  }
 0x3ff   :  { %523 = dma.vmem_to_hbm [thread:$0]  %s518_s5, 256, %s935_s7, [#allocation3], %s749_s6, %s749_s6, %s750_s0  }
 0x400   :  { %744 = dma.done.wait [#allocation3], 256  }
 0x401   :  { %745 = vsyncadd [#allocation3], 4294967040 }
 0x402   :  { %527 = vsyncpa [#allocation3], 1 }

</bundles_post_ra>
